<compile_context>
chip_gen: v6e
topology: v6e:2x2x1
jax: 0.10.0
libtpu: 0.0.40
codegen_flags: <defaults>
</compile_context>

<pallas_src>
import functools

import jax
import jax.numpy as jnp
from jax import lax
from jax.experimental import pallas as pl
from jax.experimental.pallas import tpu as pltpu


# ----------------------------- tiling / budgets --------------------------------

_ROW_TILE_TARGET = 512                    # multiple of 8 (sublanes)
_COL_TILE_TARGET = 4096                   # multiple of 128 (lanes) -> 8 MiB f32
_GN_FUSED_MAX_BLOCK_BYTES = 6 * 1024 * 1024   # f32 slab budget for the fused GN path


def _round_up(x, m):
    return ((x + m - 1) // m) * m


@functools.lru_cache(maxsize=1)
def _vmem_limit_bytes():
    """Scoped VMEM budget per generation (conservative default is v7x-safe)."""
    try:
        kind = jax.devices()[0].device_kind.lower()
    except Exception:
        kind = ""
    if ("v5" in kind) or ("v6" in kind):
        return 100 * 1024 * 1024          # 128 MiB physical VMEM
    return 48 * 1024 * 1024               # v7x: 64 MiB physical VMEM


def _tiles(rows, cols):
    tr = min(_ROW_TILE_TARGET, _round_up(rows, 8))
    tc = min(_COL_TILE_TARGET, _round_up(cols, 128))
    return tr, tc


# ----------------------------- kernels ------------------------------------------

def _gn_fused_kernel(x_ref, w_ref, b_ref, y_ref, st_ref, *, eps, inv_count):
    """Fused GroupNorm for one (sample, group) slab resident in VMEM.

    x_ref: (cpg, S)   w_ref/b_ref: (cpg, 1)   y_ref: (cpg, S)   st_ref: (cpg, 2)
    """
    x = x_ref[...].astype(jnp.float32)
    ch_sum = jnp.sum(x, axis=1, keepdims=True)          # (cpg, 1) per-channel
    ch_sq = jnp.sum(x * x, axis=1, keepdims=True)
    g_sum = jnp.sum(ch_sum, axis=0, keepdims=True)      # (1, 1) per-group
    g_sq = jnp.sum(ch_sq, axis=0, keepdims=True)
    mean = g_sum * inv_count
    var = jnp.maximum(g_sq * inv_count - mean * mean, 0.0)
    inv = lax.rsqrt(var + eps)
    scale = w_ref[...] * inv                             # (cpg, 1)
    shift = b_ref[...] - mean * scale
    y_ref[...] = (x * scale + shift).astype(y_ref.dtype)
    st_ref[:, 0:1] = ch_sum                              # for running-stat buffers
    st_ref[:, 1:2] = ch_sq


def _row_stats_kernel(x_ref, out_ref, sum_acc, sq_acc, *, total_cols, col_tile):
    """Per-row sum / sum-of-squares, accumulated lane-wide across the column axis."""
    j = pl.program_id(1)

    @pl.when(j == 0)
    def _():
        sum_acc[...] = jnp.zeros_like(sum_acc)
        sq_acc[...] = jnp.zeros_like(sq_acc)

    x = x_ref[...].astype(jnp.float32)
    tr, tc = x.shape
    if total_cols % col_tile != 0:
        # Remainder column block: zero out-of-range lanes before accumulating.
        col_ids = j * col_tile + lax.broadcasted_iota(jnp.int32, (tr, tc), 1)
        x = jnp.where(col_ids < total_cols, x, 0.0)

    # Lane-wide accumulation (pure VPU adds; no per-step XLU reduce or narrow RMW).
    s = sum_acc[...]
    q = sq_acc[...]
    for g in range(tc // 128):
        blk = x[:, g * 128:(g + 1) * 128]
        s = s + blk
        q = q + blk * blk
    sum_acc[...] = s
    sq_acc[...] = q

    @pl.when(j == pl.num_programs(1) - 1)
    def _():
        out_ref[:, 0:1] = jnp.sum(sum_acc[...], axis=1, keepdims=True)
        out_ref[:, 1:2] = jnp.sum(sq_acc[...], axis=1, keepdims=True)


def _affine_kernel(x_ref, p_ref, o_ref):
    """y = x * scale[row] + shift[row]; p_ref packs [scale, shift] as (tr, 2)."""
    x = x_ref[...].astype(jnp.float32)
    scale = p_ref[:, 0:1]
    shift = p_ref[:, 1:2]
    o_ref[...] = (x * scale + shift).astype(o_ref.dtype)


# ----------------------------- pallas_call wrappers ------------------------------

def _gn_fused(x4, w3, b3, eps):
    """x4: (N, G, cpg, S); w3/b3: (G, cpg, 1). Returns (y4, stats(N,G,cpg,2))."""
    N, G, cpg, S = x4.shape
    kernel = functools.partial(_gn_fused_kernel, eps=float(eps),
                               inv_count=1.0 / float(cpg * S))
    return pl.pallas_call(
        kernel,
        out_shape=(jax.ShapeDtypeStruct((N, G, cpg, S), x4.dtype),
                   jax.ShapeDtypeStruct((N, G, cpg, 2), jnp.float32)),
        grid_spec=pltpu.PrefetchScalarGridSpec(
            num_scalar_prefetch=0,
            grid=(N, G),
            in_specs=[pl.BlockSpec((None, None, cpg, S), lambda n, g: (n, g, 0, 0)),
                      pl.BlockSpec((None, cpg, 1), lambda n, g: (g, 0, 0)),
                      pl.BlockSpec((None, cpg, 1), lambda n, g: (g, 0, 0))],
            out_specs=(pl.BlockSpec((None, None, cpg, S), lambda n, g: (n, g, 0, 0)),
                       pl.BlockSpec((None, None, cpg, 2), lambda n, g: (n, g, 0, 0))),
        ),
        compiler_params=pltpu.CompilerParams(
            dimension_semantics=("parallel", "parallel"),
            vmem_limit_bytes=_vmem_limit_bytes()),
    )(x4, w3, b3)


def _row_stats(x2d):
    """Returns (rows, 2) f32: [:,0] = per-row sum, [:,1] = per-row sum of squares."""
    rows, cols = x2d.shape
    tr, tc = _tiles(rows, cols)
    grid = (pl.cdiv(rows, tr), pl.cdiv(cols, tc))
    # TODO(synk): for tiny N*C on v7x, fatten the row axis (reshape) so the
    # "parallel" axis has >=2 blocks and both TensorCores are used.
    kernel = functools.partial(_row_stats_kernel, total_cols=cols, col_tile=tc)
    return pl.pallas_call(
        kernel,
        out_shape=jax.ShapeDtypeStruct((rows, 2), jnp.float32),
        grid_spec=pltpu.PrefetchScalarGridSpec(
            num_scalar_prefetch=0,
            grid=grid,
            in_specs=[pl.BlockSpec((tr, tc), lambda i, j: (i, j))],
            out_specs=pl.BlockSpec((tr, 2), lambda i, j: (i, 0)),
            scratch_shapes=[pltpu.VMEM((tr, 128), jnp.float32),
                            pltpu.VMEM((tr, 128), jnp.float32)],
        ),
        compiler_params=pltpu.CompilerParams(
            dimension_semantics=("parallel", "arbitrary"),
            vmem_limit_bytes=_vmem_limit_bytes()),
    )(x2d)


def _apply_affine(x2d, params_rows2):
    """params_rows2: (rows, 2) f32 = [scale, shift] per row."""
    rows, cols = x2d.shape
    tr, tc = _tiles(rows, cols)
    grid = (pl.cdiv(rows, tr), pl.cdiv(cols, tc))
    return pl.pallas_call(
        _affine_kernel,
        out_shape=jax.ShapeDtypeStruct((rows, cols), x2d.dtype),
        grid_spec=pltpu.PrefetchScalarGridSpec(
            num_scalar_prefetch=0,
            grid=grid,
            in_specs=[pl.BlockSpec((tr, tc), lambda i, j: (i, j)),
                      pl.BlockSpec((tr, 2), lambda i, j: (i, 0))],
            out_specs=pl.BlockSpec((tr, tc), lambda i, j: (i, j)),
        ),
        compiler_params=pltpu.CompilerParams(
            dimension_semantics=("parallel", "parallel"),
            vmem_limit_bytes=_vmem_limit_bytes()),
    )(x2d, params_rows2.astype(jnp.float32))


# ----------------------------- module state / forward ----------------------------

def init_norm2d_state(num_features, *, use_gn, track_stats, weight=None, bias=None):
    state = {
        "weight": (jnp.ones((num_features,), jnp.float32)
                   if weight is None else jnp.asarray(weight, jnp.float32)),
        "bias": (jnp.zeros((num_features,), jnp.float32)
                 if bias is None else jnp.asarray(bias, jnp.float32)),
    }
    if not use_gn:
        state["bn_running_mean"] = jnp.zeros((num_features,), jnp.float32)
        state["bn_running_var"] = jnp.ones((num_features,), jnp.float32)
    if track_stats:
        state["train_running_mean"] = jnp.zeros((num_features,), jnp.float32)
        state["train_running_var"] = jnp.ones((num_features,), jnp.float32)
        state["test_running_mean"] = jnp.zeros((num_features,), jnp.float32)
        state["test_running_var"] = jnp.ones((num_features,), jnp.float32)
    return state


def norm2d_stats(state):
    """Equivalent of Norm2d.stats()."""
    if "train_running_mean" not in state:
        return None
    return (float(jnp.mean(state["test_running_mean"]) /
                  jnp.mean(state["train_running_mean"])),
            float(jnp.mean(state["test_running_var"]) /
                  jnp.mean(state["train_running_var"])))


def norm2d_forward(x, state, *, use_gn, gn_groups, track_stats, training,
                   eps=1e-5, momentum=0.1, force_two_pass_gn=False):
    """Functional forward of Norm2d. Returns (y, new_state)."""
    N, C, H, W = x.shape
    S = H * W
    rows = N * C
    new_state = dict(state)
    weight = state["weight"].astype(jnp.float32)
    bias = state["bias"].astype(jnp.float32)

    row_sum = row_sq = None                     # per-(sample, channel) sums, (N, C)

    if use_gn:
        G = gn_groups
        cpg = C // G
        fused = (not force_two_pass_gn) and (cpg * S * 4 <= _GN_FUSED_MAX_BLOCK_BYTES)
        if fused:
            y4, st = _gn_fused(x.reshape(N, G, cpg, S),
                               weight.reshape(G, cpg, 1),
                               bias.reshape(G, cpg, 1), eps)
            y = y4.reshape(N, C, H, W)
            if track_stats:
                row_sum = st[..., 0].reshape(N, C)
                row_sq = st[..., 1].reshape(N, C)
        else:
            # Two-pass fallback for group slabs too large for a VMEM-resident block.
            x2d = x.reshape(rows, S)
            st = _row_stats(x2d)
            row_sum = st[:, 0].reshape(N, C)
            row_sq = st[:, 1].reshape(N, C)
            gcnt = float(cpg * S)
            g_mean = row_sum.reshape(N, G, cpg).sum(-1) / gcnt          # (N, G)
            g_msq = row_sq.reshape(N, G, cpg).sum(-1) / gcnt
            g_var = jnp.maximum(g_msq - g_mean * g_mean, 0.0)
            inv = lax.rsqrt(g_var + eps)
            inv_rows = jnp.repeat(inv, cpg, axis=1).reshape(rows)
            mean_rows = jnp.repeat(g_mean, cpg, axis=1).reshape(rows)
            scale_rows = jnp.tile(weight, N) * inv_rows
            shift_rows = jnp.tile(bias, N) - mean_rows * scale_rows
            y = _apply_affine(
                x2d, jnp.stack([scale_rows, shift_rows], axis=1)).reshape(N, C, H, W)
    else:
        # BatchNorm2d
        x2d = x.reshape(rows, S)
        if training or track_stats:
            st = _row_stats(x2d)
            row_sum = st[:, 0].reshape(N, C)
            row_sq = st[:, 1].reshape(N, C)

        cnt = float(N * S)
        if row_sum is not None:
            ch_mean = row_sum.sum(0) / cnt
            ch_var = jnp.maximum(row_sq.sum(0) / cnt - ch_mean * ch_mean, 0.0)
        if training:
            mean_c, var_c = ch_mean, ch_var
            unb = ch_var * cnt / (cnt - 1.0)
            new_state["bn_running_mean"] = (state["bn_running_mean"] * (1.0 - momentum)
                                            + momentum * ch_mean)
            new_state["bn_running_var"] = (state["bn_running_var"] * (1.0 - momentum)
                                           + momentum * unb)
        else:
            mean_c = state["bn_running_mean"].astype(jnp.float32)
            var_c = state["bn_running_var"].astype(jnp.float32)
        inv_c = lax.rsqrt(var_c + eps)
        scale_c = weight * inv_c
        shift_c = bias - mean_c * scale_c
        y = _apply_affine(
            x2d, jnp.stack([jnp.tile(scale_c, N), jnp.tile(shift_c, N)], axis=1)
        ).reshape(N, C, H, W)

    if track_stats:
        cnt = float(N * S)
        ch_mean = row_sum.sum(0) / cnt
        ch_var = jnp.maximum(row_sq.sum(0) / cnt - ch_mean * ch_mean, 0.0)
        unb = ch_var * cnt / (cnt - 1.0)
        km = "train_running_mean" if training else "test_running_mean"
        kv = "train_running_var" if training else "test_running_var"
        new_state[km] = state[km] * (1.0 - momentum) + momentum * ch_mean
        new_state[kv] = state[kv] * (1.0 - momentum) + momentum * unb

    return y, new_state


# ----------------------------- pure-JAX reference --------------------------------

def _ref_forward(x, state, *, use_gn, gn_groups, track_stats, training,
                 eps=1e-5, momentum=0.1):
    N, C, H, W = x.shape
    ns = dict(state)
    if track_stats:
        m = x.mean(axis=(0, 2, 3))
        v = ((x - m.reshape(1, C, 1, 1)) ** 2).mean(axis=(0, 2, 3))
        n = x.size / C
        unb = v * n / (n - 1.0)
        km = "train_running_mean" if training else "test_running_mean"
        kv = "train_running_var" if training else "test_running_var"
        ns[km] = state[km] * (1.0 - momentum) + momentum * m
        ns[kv] = state[kv] * (1.0 - momentum) + momentum * unb
    w = state["weight"].reshape(1, C, 1, 1)
    b = state["bias"].reshape(1, C, 1, 1)
    if use_gn:
        xg = x.reshape(N, gn_groups, -1)
        gm = xg.mean(axis=-1, keepdims=True)
        gv = ((xg - gm) ** 2).mean(axis=-1, keepdims=True)
        y = ((xg - gm) / jnp.sqrt(gv + eps)).reshape(N, C, H, W) * w + b
    else:
        if training:
            m = x.mean(axis=(0, 2, 3))
            v = ((x - m.reshape(1, C, 1, 1)) ** 2).mean(axis=(0, 2, 3))
            n = x.size / C
            ns["bn_running_mean"] = (state["bn_running_mean"] * (1.0 - momentum)
                                     + momentum * m)
            ns["bn_running_var"] = (state["bn_running_var"] * (1.0 - momentum)
                                    + momentum * (v * n / (n - 1.0)))
        else:
            m = state["bn_running_mean"]
            v = state["bn_running_var"]
        y = ((x - m.reshape(1, C, 1, 1)) / jnp.sqrt(v.reshape(1, C, 1, 1) + eps)
             * w + b)
    return y, ns


# ----------------------------- demo / checks -------------------------------------

if __name__ == "__main__":
    key = jax.random.PRNGKey(0)
    kx, kw, kb = jax.random.split(key, 3)
    N, C, H, W = 2, 4, 16, 16
    x = jax.random.normal(kx, (N, C, H, W), dtype=jnp.float32) * 2.0 + 0.5
    w = 1.0 + 0.1 * jax.random.normal(kw, (C,), dtype=jnp.float32)
    b = 0.1 * jax.random.normal(kb, (C,), dtype=jnp.float32)

    # ---- GroupNorm fused path, track_stats, training ----
    st0 = init_norm2d_state(C, use_gn=True, track_stats=True, weight=w, bias=b)
    y_gn, st_gn = norm2d_forward(x, st0, use_gn=True, gn_groups=2,
                                 track_stats=True, training=True)
    y_gn_ref, st_gn_ref = _ref_forward(x, st0, use_gn=True, gn_groups=2,
                                       track_stats=True, training=True)
    assert y_gn.shape == x.shape
    assert bool(jnp.allclose(y_gn, y_gn_ref, atol=1e-4, rtol=1e-4))
    assert bool(jnp.allclose(st_gn["train_running_mean"],
                             st_gn_ref["train_running_mean"], atol=1e-5))
    assert bool(jnp.allclose(st_gn["train_running_var"],
                             st_gn_ref["train_running_var"], atol=1e-4))

    # ---- GroupNorm two-pass fallback path (forced) ----
    y_gn2, st_gn2 = norm2d_forward(x, st0, use_gn=True, gn_groups=2,
                                   track_stats=True, training=True,
                                   force_two_pass_gn=True)
    assert bool(jnp.allclose(y_gn2, y_gn_ref, atol=1e-4, rtol=1e-4))
    assert bool(jnp.allclose(st_gn2["train_running_mean"],
                             st_gn_ref["train_running_mean"], atol=1e-5))

    # ---- BatchNorm path, training (batch stats + running update) ----
    st0 = init_norm2d_state(C, use_gn=False, track_stats=True, weight=w, bias=b)
    y_bn, st1 = norm2d_forward(x, st0, use_gn=False, gn_groups=0,
                               track_stats=True, training=True)
    y_bn_ref, st1_ref = _ref_forward(x, st0, use_gn=False, gn_groups=0,
                                     track_stats=True, training=True)
    assert bool(jnp.allclose(y_bn, y_bn_ref, atol=1e-4, rtol=1e-4))
    assert bool(jnp.allclose(st1["bn_running_mean"], st1_ref["bn_running_mean"],
                             atol=1e-5))
    assert bool(jnp.allclose(st1["bn_running_var"], st1_ref["bn_running_var"],
                             atol=1e-4))
    assert bool(jnp.allclose(st1["train_running_mean"],
                             st1_ref["train_running_mean"], atol=1e-5))

    # ---- BatchNorm path, eval (running stats + test_running update) ----
    y_ev, st2 = norm2d_forward(x, st1, use_gn=False, gn_groups=0,
                               track_stats=True, training=False)
    y_ev_ref, st2_ref = _ref_forward(x, st1_ref, use_gn=False, gn_groups=0,
                                     track_stats=True, training=False)
    assert bool(jnp.allclose(y_ev, y_ev_ref, atol=1e-4, rtol=1e-4))
    assert bool(jnp.allclose(st2["test_running_mean"],
                             st2_ref["test_running_mean"], atol=1e-5))
    assert bool(jnp.allclose(st2["test_running_var"],
                             st2_ref["test_running_var"], atol=1e-4))
    assert norm2d_stats(st2) is not None

    jax.block_until_ready((y_gn, y_gn2, y_bn, y_ev))
    print("KERNEL_OK")
</pallas_src>

<mosaic_0001>
module attributes {stable_mosaic.version = 11 : i64} {
  func.func @_gn_fused_kernel(%arg0: i32, %arg1: i32, %arg2: memref<1x1x2x256xf32, #tpu.memory_space<vmem>>, %arg3: memref<1x2x1xf32, #tpu.memory_space<vmem>>, %arg4: memref<1x2x1xf32, #tpu.memory_space<vmem>>, %arg5: memref<1x1x2x256xf32, #tpu.memory_space<vmem>>, %arg6: memref<1x1x2x2xf32, #tpu.memory_space<vmem>>) attributes {dimension_semantics = [#tpu.dimension_semantics<parallel>, #tpu.dimension_semantics<parallel>], iteration_bounds = array<i64: 2, 2>, scalar_prefetch = 0 : i64, scratch_operands = 0 : i64, tpu.core_type = #tpu.core_type<tc>, window_params = [{transform_indices = @transform_0, window_bounds = array<i64: 1, 1, 2, 256>}, {transform_indices = @transform_1, window_bounds = array<i64: 1, 2, 1>}, {transform_indices = @transform_2, window_bounds = array<i64: 1, 2, 1>}, {transform_indices = @transform_3, window_bounds = array<i64: 1, 1, 2, 256>}, {transform_indices = @transform_4, window_bounds = array<i64: 1, 1, 2, 2>}]} {
    %c0 = arith.constant 0 : index
    %c0_0 = arith.constant 0 : index
    %c0_1 = arith.constant 0 : index
    %c0_2 = arith.constant 0 : index
    %0 = vector.load %arg2[%c0, %c0_0, %c0_1, %c0_2] : memref<1x1x2x256xf32, #tpu.memory_space<vmem>>, vector<1x1x2x256xf32>
    %1 = vector.shape_cast %0 : vector<1x1x2x256xf32> to vector<2x256xf32>
    %cst = arith.constant dense<0.000000e+00> : vector<2xf32>
    %2 = vector.multi_reduction <add>, %1, %cst [1] : vector<2x256xf32> to vector<2xf32>
    %3 = vector.shape_cast %2 : vector<2xf32> to vector<2x1xf32>
    %4 = arith.mulf %1, %1 : vector<2x256xf32>
    %cst_3 = arith.constant dense<0.000000e+00> : vector<2xf32>
    %5 = vector.multi_reduction <add>, %4, %cst_3 [1] : vector<2x256xf32> to vector<2xf32>
    %6 = vector.shape_cast %5 : vector<2xf32> to vector<2x1xf32>
    %cst_4 = arith.constant dense<0.000000e+00> : vector<1xf32>
    %7 = vector.multi_reduction <add>, %3, %cst_4 [0] : vector<2x1xf32> to vector<1xf32>
    %8 = vector.shape_cast %7 : vector<1xf32> to vector<1x1xf32>
    %cst_5 = arith.constant dense<0.000000e+00> : vector<1xf32>
    %9 = vector.multi_reduction <add>, %6, %cst_5 [0] : vector<2x1xf32> to vector<1xf32>
    %10 = vector.shape_cast %9 : vector<1xf32> to vector<1x1xf32>
    %cst_6 = arith.constant 0.001953125 : f32
    %11 = vector.broadcast %cst_6 : f32 to vector<1x1xf32>
    %12 = arith.mulf %8, %11 : vector<1x1xf32>
    %cst_7 = arith.constant 0.001953125 : f32
    %13 = vector.broadcast %cst_7 : f32 to vector<1x1xf32>
    %14 = arith.mulf %10, %13 : vector<1x1xf32>
    %15 = arith.mulf %12, %12 : vector<1x1xf32>
    %16 = arith.subf %14, %15 : vector<1x1xf32>
    %cst_8 = arith.constant 0.000000e+00 : f32
    %17 = vector.broadcast %cst_8 : f32 to vector<1x1xf32>
    %18 = arith.maximumf %16, %17 : vector<1x1xf32>
    %cst_9 = arith.constant 9.99999974E-6 : f32
    %19 = vector.broadcast %cst_9 : f32 to vector<1x1xf32>
    %20 = arith.addf %18, %19 : vector<1x1xf32>
    %21 = math.rsqrt %20 : vector<1x1xf32>
    %c0_10 = arith.constant 0 : index
    %c0_11 = arith.constant 0 : index
    %c0_12 = arith.constant 0 : index
    %22 = vector.load %arg3[%c0_10, %c0_11, %c0_12] : memref<1x2x1xf32, #tpu.memory_space<vmem>>, vector<1x2x1xf32>
    %23 = vector.shape_cast %22 : vector<1x2x1xf32> to vector<2x1xf32>
    %24 = vector.broadcast %21 : vector<1x1xf32> to vector<2x1xf32>
    %25 = arith.mulf %23, %24 : vector<2x1xf32>
    %c0_13 = arith.constant 0 : index
    %c0_14 = arith.constant 0 : index
    %c0_15 = arith.constant 0 : index
    %26 = vector.load %arg4[%c0_13, %c0_14, %c0_15] : memref<1x2x1xf32, #tpu.memory_space<vmem>>, vector<1x2x1xf32>
    %27 = vector.shape_cast %26 : vector<1x2x1xf32> to vector<2x1xf32>
    %28 = vector.broadcast %12 : vector<1x1xf32> to vector<2x1xf32>
    %29 = arith.mulf %28, %25 : vector<2x1xf32>
    %30 = arith.subf %27, %29 : vector<2x1xf32>
    %31 = vector.broadcast %25 : vector<2x1xf32> to vector<2x256xf32>
    %32 = arith.mulf %1, %31 : vector<2x256xf32>
    %33 = vector.broadcast %30 : vector<2x1xf32> to vector<2x256xf32>
    %34 = arith.addf %32, %33 : vector<2x256xf32>
    %c0_16 = arith.constant 0 : index
    %c0_17 = arith.constant 0 : index
    %c0_18 = arith.constant 0 : index
    %c0_19 = arith.constant 0 : index
    %35 = vector.load %arg5[%c0_16, %c0_17, %c0_18, %c0_19] : memref<1x1x2x256xf32, #tpu.memory_space<vmem>>, vector<1x1x2x256xf32>
    %36 = vector.shape_cast %35 : vector<1x1x2x256xf32> to vector<2x256xf32>
    %37 = vector.shape_cast %34 : vector<2x256xf32> to vector<1x1x2x256xf32>
    tpu.vector_store %arg5[%c0_16, %c0_17, %c0_18, %c0_19], %37 {strides = array<i32>} : memref<1x1x2x256xf32, #tpu.memory_space<vmem>>, vector<1x1x2x256xf32>,
    %c0_20 = arith.constant 0 : index
    %c0_21 = arith.constant 0 : index
    %c0_22 = arith.constant 0 : index
    %c0_23 = arith.constant 0 : index
    %38 = vector.load %arg6[%c0_20, %c0_21, %c0_22, %c0_23] : memref<1x1x2x2xf32, #tpu.memory_space<vmem>>, vector<1x1x2x1xf32>
    %39 = vector.shape_cast %38 : vector<1x1x2x1xf32> to vector<2x1xf32>
    %40 = vector.shape_cast %3 : vector<2x1xf32> to vector<1x1x2x1xf32>
    tpu.vector_store %arg6[%c0_20, %c0_21, %c0_22, %c0_23], %40 {strides = array<i32>} : memref<1x1x2x2xf32, #tpu.memory_space<vmem>>, vector<1x1x2x1xf32>,
    %c0_24 = arith.constant 0 : index
    %c0_25 = arith.constant 0 : index
    %c0_26 = arith.constant 0 : index
    %c1 = arith.constant 1 : index
    %41 = vector.load %arg6[%c0_24, %c0_25, %c0_26, %c1] : memref<1x1x2x2xf32, #tpu.memory_space<vmem>>, vector<1x1x2x1xf32>
    %42 = vector.shape_cast %41 : vector<1x1x2x1xf32> to vector<2x1xf32>
    %43 = vector.shape_cast %6 : vector<2x1xf32> to vector<1x1x2x1xf32>
    tpu.vector_store %arg6[%c0_24, %c0_25, %c0_26, %c1], %43 {strides = array<i32>} : memref<1x1x2x2xf32, #tpu.memory_space<vmem>>, vector<1x1x2x1xf32>,
    return
  }
  func.func @transform_0(%arg0: i32, %arg1: i32) -> (i32, i32, i32, i32) {
    %c0_i32 = arith.constant 0 : i32
    %c0_i32_0 = arith.constant 0 : i32
    %c0_i32_1 = arith.constant 0 : i32
    return %arg0, %arg1, %c0_i32, %c0_i32_0 : i32, i32, i32, i32
  }
  func.func @transform_1(%arg0: i32, %arg1: i32) -> (i32, i32, i32) {
    %c0_i32 = arith.constant 0 : i32
    %c0_i32_0 = arith.constant 0 : i32
    %c0_i32_1 = arith.constant 0 : i32
    return %arg1, %c0_i32, %c0_i32_0 : i32, i32, i32
  }
  func.func @transform_2(%arg0: i32, %arg1: i32) -> (i32, i32, i32) {
    %c0_i32 = arith.constant 0 : i32
    %c0_i32_0 = arith.constant 0 : i32
    %c0_i32_1 = arith.constant 0 : i32
    return %arg1, %c0_i32, %c0_i32_0 : i32, i32, i32
  }
  func.func @transform_3(%arg0: i32, %arg1: i32) -> (i32, i32, i32, i32) {
    %c0_i32 = arith.constant 0 : i32
    %c0_i32_0 = arith.constant 0 : i32
    %c0_i32_1 = arith.constant 0 : i32
    return %arg0, %arg1, %c0_i32, %c0_i32_0 : i32, i32, i32, i32
  }
  func.func @transform_4(%arg0: i32, %arg1: i32) -> (i32, i32, i32, i32) {
    %c0_i32 = arith.constant 0 : i32
    %c0_i32_0 = arith.constant 0 : i32
    %c0_i32_1 = arith.constant 0 : i32
    return %arg0, %arg1, %c0_i32, %c0_i32_0 : i32, i32, i32, i32
  }
}

</mosaic_0001>

<bundles_post_ra>
// kernel: tpu_custom_call.1
= control target key start
LH: loop header
LB: loop body
LE: loop exit
PB: predicated region body
PF: predicated region fallthrough
CT: control target
= control target key end

     0   :  { %10 = vsyncpa [#allocation3], 0  ;;  %s1061_s0 = inlined_call_operand.hbm [shape: f32[2,2,2,256], index: 0, kind: input, shape index: {}]   ;;  %s1062_s1 = inlined_call_operand.vmem [shape: f32[2,2,1], index: 1, kind: input, shape index: {}]   ;;  %s1063_s2 = inlined_call_operand.vmem [shape: f32[2,2,1], index: 2, kind: input, shape index: {}]   ;;  %s1064_s3 = inlined_call_operand.hbm [shape: f32[2,2,2,256], index: 3, kind: output, shape index: {0}]   ;;  %s1065_s4 = inlined_call_operand.hbm [shape: f32[2,2,2,2], index: 4, kind: output, shape index: {1}]  }
   0x1   :  { %12 = vsyncpa [#allocation3 + $0x1], 0 }
   0x2   :  { %13 = vsyncpa [#allocation4], 0 }
   0x3   :  { %15 = vsyncpa [#allocation4 + $0x1], 0 }
   0x4   :  { %16 = vsyncpa [#allocation7], 0 }
   0x5   :  { %18 = vsyncpa [#allocation7 + $0x1], 0  ;;  %s853_s15 = smov 0   ;;  %s855_s16 = smov 0  }
   0x6   :  { %s857_s17 = smov 0   ;;  %s859_s18 = smov 0  }
   0x7   :  { %s861_s19 = smov 0   ;;  %s863_s20 = smov 0  }
   0x8   :  { %s865_s21 = smov 0   ;;  %s867_s22 = smov 0  }
   0x9 LB: > { %s553_s23 = sadd.s32 4294967295, %s820_s22   ;;  %s554_s24 = sadd.s32 4294967294, %s820_s22   ;;  %s820_s22 = sphi %s867_s22, %s24_s22   ;;  %s816_s21 = sphi %s865_s21, %s1084_s21   ;;  %s812_s20 = sphi %s863_s20, %s1083_s20   ;;  %s808_s19 = sphi %s861_s19, %s1082_s19   ;;  %s804_s18 = sphi %s859_s18, %s1081_s18   ;;  %s800_s17 = sphi %s857_s17, %s1080_s17   ;;  %s796_s16 = sphi %s855_s16, %s1079_s16   ;;  %s792_s15 = sphi %s853_s15, %s1078_s15  }
   0xa   : > { %s33_s25 = sadd.s32 1, %s812_s20  ;;  %s36_s26 = sadd.s32 1, %s816_s21 }
   0xb   : > { %p34_p0 = scmp.ge.s32.totalorder %s33_s25, 2  ;;  %s45_s27 = sadd.s32 1, %s800_s17 }
   0xc   : > { %p52_p1 = scmp.ne.s32.totalorder %s800_s17, %s796_s16  ;;  %p53_p2 = scmp.eq.s32.totalorder %s820_s22, 0 }
   0xd   : > { %s1086_s25 = smov (%p34_p0, %s33_s25), 0  ;;  %s1088_s26 = smov (!%p34_p0, %s36_s26), %s816_s21 }
   0xe   : > { %1068 = sst [smem:[#allocation11_spill]] %s1086_s25  ;;  %s41_s28 = ssub.s32 %s812_s20, %s1086_s25 }
   0xf   : > { %p906_p3 = por %p53_p2, %p52_p1  ;;  %p38_p4 = scmp.ge.s32.totalorder %s1088_s26, 2 }
  0x10   : > { %p58_p5 = scmp.ne.s32.totalorder %s796_s16, %s792_s15  ;;  %p59_p6 = scmp.eq.s32.totalorder %s553_s23, 0 }
  0x11   : > { %p136_p7 = scmp.eq.s32.totalorder %s553_s23, 3  ;;  %s1090_s26 = smov (%p38_p4, %s1088_s26), 0 }
  0x12   : > { %1070 = sst [smem:[#allocation12_spill]] %s1090_s26  ;;  %p914_p8 = por %p59_p6, %p58_p5 }
  0x13   : > { %p918_p9 = por %p136_p7, %p52_p1  ;;  %s40_s6 = ssub.s32 %s816_s21, %s1090_s26 }
  0x14   : > { %p142_p10 = scmp.eq.s32.totalorder %s554_s24, 3  ;;  %s42_s7 = sor.u32 %s41_s28, %s40_s6 }
  0x15   : > { %p43_p11 = scmp.eq.s32.totalorder %s42_s7, 0  ;;  %p593_p13 = scmp.lt.s32.totalorder %s820_s22, 4 }
  0x16   : > { %p924_p12 = por %p142_p10, %p58_p5  ;;  %s190_s9 = sand.u32 1, %s800_s17  }
  0x17   : > { %s931_s10 = scalar_select %p43_p11, %s800_s17, %s45_s27  }
  0x18   : > { %s1073_s8 = scalar_select %p924_p12, 1, 0 }
  0x19   : > { %s557_s11 = sshll.u32 %s190_s9, 2  ;;  %s558_s12 = sshll.u32 %s812_s20, 1 }
  0x1a   : > { %s559_s13 = sshll.u32 %s816_s21, 2  ;;  %s194_s14 = scalar_lea.vmem [#allocation2], %s557_s11 }
  0x1b   : > { %s204_s23 = sshll.u32 %s194_s14, 4  ;;  %s200_s26 = sadd.s32 %s559_s13, %s558_s12  ;;  %s205_s23 = int_to_ptr.vmem [resolvable:$true] %s204_s23 }
  0x1c   : > { %s560_s24 = sshll.u32 %s200_s26, 5  ;;  %p937_p0 = pnand %p593_p13, %p906_p3 }
  0x1d   : > { %s202_s25 = scalar_lea.hbm %s1061_s0, %s560_s24  ;;  %p561_p1 = scmp.ge.s32.totalorder %s820_s22, 1 }
  0x1e   : > { %p223_p2 = scmp.lt.s32.totalorder %s820_s22, 5  ;;  %s191_s27 = scalar_lea.sflag [#allocation3], %s190_s9 }
  0x1f   : > { %p668_p4 = pneg %p937_p0  ;;  %s679_s11 = scalar_lea.vmem %s205_s23, 64 }
  0x20   : > { %p680_p5 = scmp.ne.s32.totalorder %s205_s23, %s679_s11  ;;  %s822_s26 = smov [#allocation2]  }
  0x21   : > { %s684_s29 = sshll.u32 %s822_s26, 4  ;;  %s685_s29 = int_to_ptr.vmem [resolvable:$false] %s684_s29 }
  0x22   : > { %p682_p6 = pnand %p680_p5, %p668_p4  ;;  %s686_s12 = scalar_lea.vmem %s685_s29, 128 }
  0x23   : > { %p687_p3 = scmp.lt.s32.totalorder %s205_s23, %s685_s29  ;;  %p688_p10 = scmp.lt.s32.totalorder %s686_s12, %s679_s11 }
  0x24   : > { %p683_p7 = pneg %p682_p6 }
  0x25   : > { %p689_p11 = por %p688_p10, %p687_p3 }
  0x27   : > { %p690_p13 = pnand %p689_p11, %p683_p7 }
  0x29   : > { %693 = shalt.err (!%p690_p13)
}
  0x2a   : > { %585 = dma.hbm_to_vmem [thread:$0]  (!%p937_p0), %s202_s25, 64, %s205_s23, %s191_s27  }
  0x2b   : > { %p224_p12 = pnand %p561_p1, %p223_p2 }
  0x2c   : > { %s955_s9 = sand.u32 (!%p224_p12), 1, %s796_s16  }
  0x2d   : > { %227 = sbr.rel (%p224_p12) target bundleno = 389 (0x185), region = 32  ;;  %s562_s13 = sshll.u32 (!%p224_p12), %s955_s9, 2 }
  0x2e   : > { %s230_s14 = scalar_lea.sflag (!%p224_p12), [#allocation3], %s955_s9  ;;  %s233_s24 = scalar_lea.vmem (!%p224_p12), [#allocation2], %s562_s13 }
  0x32   : > { %779 = dma.done.wait (%p914_p8), %s230_s14, 64  }
  0x33   : > { %781 = vsyncadd (%p914_p8), %s230_s14, 4294967232  ;;  %v284_v0 = vlaneseq  ;;  %v823_v1 = vmov 1983009808   ;;  %v968_v6 = vld [vmem:[%s233_s24] sm:$0xf]  ;;  %vm291_vm0 = vcmask 1041408  }
  0x34   : > { %v282_v2 = vunpack.c.l.s4 %v823_v1  ;;  %v297_v8 = vmul.f32 %v968_v6, %v968_v6  ;;  %v824_v18 = vmov 0   ;;  %s564_s25 = sshll.u32 %s955_s9, 1  ;;  %vm367_vm1 = vcmask 1024   ;;  %p271_p8 = scmp.lt.s32.totalorder %s804_s18, 1 }
  0x35   : > { %v965_v3 = vshrl.u32 %v284_v0, 7  ;;  %662 = vset.pattern.permute.xlu1 %v824_v18  ;;  %663 = vset.pattern.permute.xlu0 %v824_v18  ;;  %s979_s30 = scalar_lea.vmem [#allocation6], %s564_s25  ;;  %vm369_vm2 = vcmask 9224   ;;  %s572_s12 = sshll.u32 %s808_s19, 1 }
  0x36   : > { %v283_v4 = vunpack.c.0.s8 %v282_v2  ;;  %s272_s23 = scalar_select %p271_p8, %s804_s18, 1 }
  0x37   : > { %s408_s14 = sshll.u32 %s979_s30, 4  ;;  %s404_s24 = sadd.s32 %s804_s18, %s572_s12  ;;  %s409_s14 = int_to_ptr.vmem [resolvable:$true] %s408_s14 }
  0x38   : > { %v286_v5 = vsub.s32 %v283_v4, %v965_v3  ;;  %s565_s28 = sshll.u32 %s272_s23, 1  ;;  %s573_s25 = sshll.u32 %s404_s24, 5 }
  0x39   : > { %s274_s27 = scalar_lea.vmem %s1062_s1, %s565_s28  ;;  %s278_s29 = scalar_lea.vmem %s1063_s2, %s565_s28 }
  0x3a   : > { %v287_v7 = vrot.slane %v968_v6, %v286_v5  ;;  %v305_v11 = vrot.slane %v297_v8, %v286_v5  ;;  %v335_v41 = vld [vmem:[%s274_s27] sm:$0x3]  ;;  %s406_s7 = scalar_lea.hbm %s1065_s4, %s573_s25  ;;  %s377_s27 = scalar_lea.sflag [#allocation7], %s955_s9 }
  0x3b   : > { %v337_v44 = vld [vmem:[%s278_s29] sm:$0x3]  ;;  %s694_s11 = scalar_lea.vmem %s409_s14, 32  ;;  %s825_s28 = smov [#allocation6]  }
  0x3c   : > { %v288_v9 = vcombine.high %v287_v7, %v287_v7  ;;  %v292_v10 = vsel %vm291_vm0, %v287_v7, 0.0  ;;  %v306_v13 = vcombine.high %v305_v11, %v305_v11  ;;  %v309_v14 = vsel %vm291_vm0, %v305_v11, 0.0  ;;  %p695_p12 = scmp.ne.s32.totalorder %s409_s14, %s694_s11  ;;  %s698_s26 = sshll.u32 %s825_s28, 4  ;;  %s699_s26 = int_to_ptr.vmem [resolvable:$false] %s698_s26 }
  0x3d   : > { %s700_s29 = scalar_lea.vmem %s699_s26, 64  ;;  %p701_p2 = scmp.lt.s32.totalorder %s409_s14, %s699_s26 }
  0x3e   : > { %v293_v12 = vsel %vm291_vm0, %v288_v9, 0.0  ;;  %v310_v16 = vsel %vm291_vm0, %v306_v13, 0.0  ;;  %p696_p0 = pnand %p695_p12, %p918_p9  ;;  %p702_p4 = scmp.lt.s32.totalorder %s700_s29, %s694_s11 }
  0x3f   : > { %v294_v15 = vadd.f32 %v293_v12, %v292_v10  ;;  %v311_v17 = vadd.f32 %v310_v16, %v309_v14 }
  0x40   : > { %p697_p1 = pneg %p696_p0  ;;  %p703_p5 = por %p702_p4, %p701_p2 }
  0x41   : > { %295 = vadd.xlane.f32.xlu0 %v294_v15 }
  0x42   : > { %p704_p6 = pnand %p703_p5, %p697_p1 }
  0x45   : > { %312 = vadd.xlane.f32.xlu0 %v311_v17 }
  0xca   : > { %v296_v19 = vpop.xlane.xlu0 %295 }
  0xcb   : > { %v314_v20 = vsel %vm291_vm0, %v296_v19, 0.0  ;;  %368 = vst.msk [vmem:[%s979_s30] sm:$0x3] %vm367_vm1, %v296_v19 }
  0xcc   : > { %v315_v21 = vrot.slane %v314_v20, 4 }
  0xce   : > { %v316_v22 = vadd.f32 %v315_v21, %v314_v20  ;;  %v313_v23 = vpop.xlane.xlu0 %312 }
  0xcf   : > { %v321_v24 = vsel %vm291_vm0, %v313_v23, 0.0  ;;  %370 = vst.msk [vmem:[%s979_s30] sm:$0x3] %vm369_vm2, %v313_v23 }
  0xd0   : > { %v317_v25 = vrot.slane %v316_v22, 2  ;;  %v322_v26 = vrot.slane %v321_v24, 4 }
  0xd2   : > { %v318_v27 = vadd.f32 %v317_v25, %v316_v22  ;;  %v323_v28 = vadd.f32 %v322_v26, %v321_v24 }
  0xd4   : > { %v319_v29 = vrot.slane %v318_v27, 1  ;;  %v324_v30 = vrot.slane %v323_v28, 2 }
  0xd6   : > { %v325_v31 = vadd.f32 %v324_v30, %v323_v28  ;;  %v320_v32 = vadd.f32 %v319_v29, %v318_v27 }
  0xd8   : > { %v326_v33 = vrot.slane %v325_v31, 1  ;;  %v328_v34 = vmul.f32 0.001953125, %v320_v32 }
  0xda   : > { %v327_v35 = vadd.f32 %v326_v33, %v325_v31  ;;  %v330_v37 = vmul.f32 %v328_v34, %v328_v34 }
  0xdc   : > { %v329_v36 = vmul.f32 0.001953125, %v327_v35 }
  0xde   : > { %v331_v38 = vsub.f32 %v329_v36, %v330_v37 }
  0xe0   : > { %v332_v39 = vmax.f32 %v331_v38, 0.0 }
  0xe2   : > { %v333_v40 = vadd.f32 1e-05, %v332_v39 }
  0xe4   : > { %664 = vrsqrt.f32 %v333_v40 }
  0xf1   : > { %v665_v42 = vpop.eup %664 }
  0xf2   : > { %v336_v43 = vmul.f32 %v665_v42, %v335_v41 }
  0xf4   : > { %342 = vperm.xlu1 %662, %v336_v43   ;;  %v338_v45 = vmul.f32 %v336_v43, %v328_v34 }
  0xf6   : > { %v339_v46 = vsub.f32 %v337_v44, %v338_v45 }
  0xf8   : > { %355 = vperm.xlu1 %662, %v339_v46  }
  0xf9   : > { %707 = shalt.err (!%p704_p6)
}
  0xfa   : > { %s708_s30 = scalar_lea.hbm %s406_s7, 32  ;;  %s712_s25 = scalar_lea.hbm %s1065_s4, 128 }
  0xfb   : > { %p709_p7 = scmp.ne.s32.totalorder %s406_s7, %s708_s30  ;;  %p713_p11 = scmp.lt.s32.totalorder %s406_s7, %s1065_s4 }
  0xfc   : > { %p714_p13 = scmp.lt.s32.totalorder %s712_s25, %s708_s30 }
  0xfd   : > { %p710_p3 = pnand %p709_p7, %p918_p9 }
  0xfe   : > { %p715_p8 = por %p714_p13, %p713_p11 }
  0xff   : > { %p711_p10 = pneg %p710_p3 }
 0x101   : > { %p716_p12 = pnand %p715_p8, %p711_p10 }
 0x103   : > { %719 = shalt.err (!%p716_p12)
}
 0x104   : > { %579 = dma.vmem_to_hbm [thread:$0]  (%p918_p9), %s409_s14, 32, %s406_s7, %s377_s27   ;;  %v826_v47 = vmov 269488144  }
 0x105   : > { %v345_v48 = vunpack.c.l.s4 %v826_v47  ;;  %s569_s11 = sshll.u32 %s804_s18, 1  ;;  %s570_s28 = sshll.u32 %s808_s19, 2 }
 0x106   : > { %s389_s26 = sadd.s32 %s570_s28, %s569_s11  ;;  %s263_s30 = scalar_lea.vmem [#allocation5], %s562_s13 }
 0x107   : > { %v346_v49 = vunpack.c.0.s8 %v345_v48  ;;  %s571_s29 = sshll.u32 %s389_s26, 5  ;;  %s393_s12 = sshll.u32 %s263_s30, 4  ;;  %s394_s12 = int_to_ptr.vmem [resolvable:$true] %s393_s12 }
 0x108   : > { %s391_s27 = scalar_lea.hbm %s1064_s3, %s571_s29  ;;  %s372_s18 = scalar_lea.sflag [#allocation4], %s955_s9 }
 0x109   : > { %v349_v50 = vsub.s32 %v346_v49, %v965_v3  ;;  %s720_s19 = scalar_lea.vmem %s394_s12, 64  ;;  %s827_s24 = smov [#allocation5]  }
 0x10a   : > { %p721_p0 = scmp.ne.s32.totalorder %s394_s12, %s720_s19  ;;  %s724_s25 = sshll.u32 %s827_s24, 4  ;;  %s725_s25 = int_to_ptr.vmem [resolvable:$false] %s724_s25 }
 0x10b   : > { %s726_s13 = scalar_lea.vmem %s725_s25, 128  ;;  %p727_p4 = scmp.lt.s32.totalorder %s394_s12, %s725_s25 }
 0x10c   : > { %p722_p1 = pnand %p721_p0, %p918_p9  ;;  %p728_p5 = scmp.lt.s32.totalorder %s726_s13, %s720_s19 }
 0x10e   : > { %p723_p2 = pneg %p722_p1  ;;  %p729_p6 = por %p728_p5, %p727_p4 }
 0x110   : > { %p730_p7 = pnand %p729_p6, %p723_p2 }
 0x16f   : > { %v343_v51 = vpop.permute.xlu1 %342 }
 0x170   : > { %v350_v52 = vrot.slane %v343_v51, %v349_v50 }
 0x172   : > { %v352_v54 = vmul.f32 %v350_v52, %v968_v6 }
 0x173   : > { %v356_v53 = vpop.permute.xlu1 %355 }
 0x174   : > { %v363_v55 = vrot.slane %v356_v53, %v349_v50 }
 0x176   : > { %v365_v56 = vadd.f32 %v363_v55, %v352_v54 }
 0x178   : > { %366 = vst [vmem:[%s263_s30] sm:$0xf] %v365_v56 }
 0x179   : > { %733 = shalt.err (!%p730_p7)
}
 0x17a   : > { %s734_s23 = scalar_lea.hbm %s391_s27, 64  ;;  %s738_s11 = scalar_lea.hbm %s1064_s3, 256 }
 0x17b   : > { %p735_p3 = scmp.ne.s32.totalorder %s391_s27, %s734_s23  ;;  %p739_p13 = scmp.lt.s32.totalorder %s391_s27, %s1064_s3 }
 0x17c   : > { %p740_p8 = scmp.lt.s32.totalorder %s738_s11, %s734_s23 }
 0x17d   : > { %p736_p10 = pnand %p735_p3, %p918_p9 }
 0x17e   : > { %p741_p12 = por %p740_p8, %p739_p13 }
 0x17f   : > { %p737_p11 = pneg %p736_p10 }
 0x181   : > { %p742_p0 = pnand %p741_p12, %p737_p11 }
 0x183   : > { %745 = shalt.err (!%p742_p0)
}
 0x184   : > { %578 = dma.vmem_to_hbm [thread:$0]  (%p918_p9), %s394_s12, 64, %s391_s27, %s372_s18  }
 0x185 PF: > { %p594_p1 = scmp.ge.s32.totalorder %s820_s22, 2  ;;  %s420_s29 = sand.u32 1, %s792_s15  }
 0x186   : > { %p1075_p2 = scmp.ne.s32.totalorder %s1073_s8, 0  ;;  %s421_s30 = scalar_lea.sflag [#allocation4], %s420_s29 }
 0x188   : > { %p587_p4 = pnand %p594_p1, %p1075_p2 }
 0x18a   : > { %p588_p5 = pneg %p587_p4 }
 0x18c   : > { %783 = dma.done.wait (%p588_p5), %s421_s30, 64  }
 0x18d   : > { %785 = vsyncadd (%p588_p5), %s421_s30, 4294967232  ;;  %s430_s14 = scalar_lea.sflag [#allocation7], %s420_s29 }
 0x18e   : > { %787 = dma.done.wait (%p588_p5), %s430_s14, 32  }
 0x18f   : > { %789 = vsyncadd (%p588_p5), %s430_s14, 4294967264  ;;  %s24_s22 = sadd.s32 1, %s820_s22   ;;  %s1076_s5 = sld [smem:[#allocation11_spill]] }
 0x190   : > { %p21_p6 = scmp.ge.s32.totalorder %s24_s22, 6   ;;  %s1077_s12 = sld [smem:[#allocation12_spill]] }
 0x191   : > { %s1078_s15 = smov %s796_s16  ;;  %s1079_s16 = smov %s800_s17 }
 0x192   : > { %s1080_s17 = smov %s931_s10  ;;  %s1081_s18 = smov %s812_s20 }
 0x193   : > { %s1082_s19 = smov %s816_s21  ;;  %23 = sbr.rel (!%p21_p6) target bundleno = 9 (0x9), region = 100 }
 0x195   : > { %s1083_s20 = smov %s1076_s5 }
 0x196   : > { %s1084_s21 = smov %s1077_s12 }
 0x198   :  { %435 = vsyncpa [#allocation3], 1 }
 0x199   :  { %437 = vsyncpa [#allocation3 + $0x1], 1 }
 0x19a   :  { %438 = vsyncpa [#allocation4], 1 }
 0x19b   :  { %440 = vsyncpa [#allocation4 + $0x1], 1 }
 0x19c   :  { %441 = vsyncpa [#allocation7], 1 }
 0x19d   :  { %443 = vsyncpa [#allocation7 + $0x1], 1 }

</bundles_post_ra>
